<compile_context>
chip_gen: v7x
topology: tpu7x:2x2x1
jax: 0.10.0
libtpu: 0.0.40
codegen_flags: <defaults>
</compile_context>

<pallas_src>
import jax
import jax.numpy as jnp
from jax.experimental import pallas as pl
from jax.experimental.pallas import tpu as pltpu


def _round_up(x: int, m: int) -> int:
    return (x + m - 1) // m * m


_CHIP_CACHE = None
_BLOCK_TARGET_BYTES = {"v7x": 4 << 20, "v6e": 4 << 20, "v5e": 2 << 20}


def _detect_chip() -> str:
    """Best-effort TPU generation detection: 'v7x' | 'v6e' | 'v5e' | 'other'."""
    global _CHIP_CACHE
    if _CHIP_CACHE is not None:
        return _CHIP_CACHE
    chip = "other"
    kind = ""
    try:
        kind = jax.devices()[0].device_kind.lower()
    except Exception:
        kind = ""
    if "v7" in kind:
        chip = "v7x"
    elif "v6" in kind:
        chip = "v6e"
    elif "v5" in kind:
        chip = "v5e"
    else:
        try:
            info = pltpu.get_tpu_info()
            # 64 MiB VMEM per TensorCore is v7x-class; v5e/v6e have 128 MiB.
            if getattr(info, "vmem_capacity_bytes", 128 << 20) <= (96 << 20):
                chip = "v7x"
        except Exception:
            pass
    _CHIP_CACHE = chip
    return chip


def _ttanh_kernel(beta_ref, x_ref, o_ref):
    # beta_ref: (1,) f32 scalar in SMEM
    # x_ref / o_ref: (TM, TN) VMEM tiles
    beta = beta_ref[0]
    x = x_ref[...].astype(jnp.float32)
    o_ref[...] = jnp.tanh(beta * x).astype(o_ref.dtype)


def ttanh(x: jax.Array, beta) -> jax.Array:
    """Applies tanh(beta * x) elementwise, matching tTanh.forward."""
    orig_shape = x.shape
    in_dtype = x.dtype
    out_dtype = in_dtype if jnp.issubdtype(in_dtype, jnp.floating) else jnp.float32
    n_elem = x.size
    if n_elem == 0:
        return x.astype(out_dtype)

    in_bytes = jnp.dtype(in_dtype).itemsize
    out_bytes = jnp.dtype(out_dtype).itemsize
    itemsize = max(in_bytes, out_bytes)

    chip = _detect_chip()
    target = _BLOCK_TARGET_BYTES.get(chip, 2 << 20)

    # --- Pick a 2-D *view* of x (pure reshape: no HBM copies / padding). ---
    if n_elem % 128 == 0:
        cols, rows = 128, n_elem // 128          # lane-dense, unmasked full-lane stores
    else:
        # Ragged: collapse trailing dims into the lane axis until it is >= 128
        # (or we run out of dims).  Keeps lane utilization high without copies.
        cols, rows = 1, n_elem
        for d in reversed(orig_shape):
            if cols >= 128:
                break
            cols *= int(d)
            rows //= int(d)
    x2d = x.reshape(rows, cols)

    # --- Lane-axis block: full extent if an 8-row stripe fits the budget,
    #     otherwise a 128-multiple tile (masked partial last block). ---
    if cols * 8 * itemsize <= target or cols < 256:
        tn = cols
    else:
        tn = (target // (8 * itemsize)) // 128 * 128
        tn = max(128, min(tn, (cols // 128) * 128))
    gc = pl.cdiv(cols, tn)

    # --- Row block: fill the per-chip byte budget, multiple of 8 sublanes. ---
    tm = (target // max(1, tn * itemsize)) // 8 * 8
    tm = max(8, min(tm, _round_up(rows, 8)))

    # v7x only (2 TensorCores): keep the megacore split balanced on small
    # grids by rounding small odd step counts up to an even number (>= 2).
    if chip == "v7x" and gc == 1 and rows > 8:
        steps = pl.cdiv(rows, tm)
        if steps <= 8 and steps % 2 == 1:
            tm = max(8, _round_up(pl.cdiv(rows, steps + 1), 8))
    gr = pl.cdiv(rows, tm)

    beta_arr = jnp.asarray(beta, dtype=jnp.float32).reshape(1)

    cost = pl.CostEstimate(
        flops=n_elem,                               # beta * x
        transcendentals=n_elem,                     # tanh
        bytes_accessed=n_elem * (in_bytes + out_bytes),
    )

    out2d = pl.pallas_call(
        _ttanh_kernel,
        out_shape=jax.ShapeDtypeStruct((rows, cols), out_dtype),
        grid_spec=pl.GridSpec(
            grid=(gr, gc),
            in_specs=[
                pl.BlockSpec(memory_space=pltpu.SMEM),           # beta scalar
                pl.BlockSpec((tm, tn), lambda i, j: (i, j)),     # x tile
            ],
            out_specs=pl.BlockSpec((tm, tn), lambda i, j: (i, j)),
        ),
        compiler_params=pltpu.CompilerParams(
            dimension_semantics=("parallel", "parallel"),
        ),
        cost_estimate=cost,
    )(beta_arr, x2d)

    return out2d.reshape(orig_shape)


if __name__ == "__main__":
    key = jax.random.PRNGKey(0)
    k1, k2, k3 = jax.random.split(key, 3)

    # Module signature is (N, *): use (2, 4, 16, 16) like an NCHW activation.
    x = jax.random.normal(key, (2, 4, 16, 16), dtype=jnp.float32)
    beta = jnp.float32(1.0)  # PyTorch default init in __init__
    y = jax.block_until_ready(ttanh(x, beta))
    ref = jnp.tanh(beta * x)
    assert y.shape == x.shape and y.dtype == x.dtype
    assert jnp.allclose(y, ref, atol=1e-6, rtol=1e-6)

    # Ragged shape (element count not a multiple of 128): exercises the
    # collapsed-trailing-dims lane axis (cols = 105, not 7).
    x_rag = jax.random.normal(k1, (3, 5, 7), dtype=jnp.float32)
    y_rag = jax.block_until_ready(ttanh(x_rag, jnp.float32(0.5)))
    ref_rag = jnp.tanh(jnp.float32(0.5) * x_rag)
    assert y_rag.shape == x_rag.shape and y_rag.dtype == x_rag.dtype
    assert jnp.allclose(y_rag, ref_rag, atol=1e-6, rtol=1e-6)

    # bf16 input: dtype is preserved (compute in f32, cast back).
    x_bf = jax.random.normal(k2, (4, 8, 32), dtype=jnp.bfloat16)
    y_bf = jax.block_until_ready(ttanh(x_bf, beta))
    ref_bf = jnp.tanh(jnp.float32(beta) * x_bf.astype(jnp.float32)).astype(jnp.bfloat16)
    assert y_bf.shape == x_bf.shape and y_bf.dtype == x_bf.dtype
    assert jnp.allclose(y_bf.astype(jnp.float32), ref_bf.astype(jnp.float32),
                        atol=2e-2, rtol=2e-2)

    # Wide ragged lane axis: exercises the 128-multiple lane tiling with a
    # masked partial last block (and padded sublanes since rows == 1).
    x_wide = jax.random.normal(k3, (140001,), dtype=jnp.float32)
    y_wide = jax.block_until_ready(ttanh(x_wide, jnp.float32(0.75)))
    ref_wide = jnp.tanh(jnp.float32(0.75) * x_wide)
    assert y_wide.shape == x_wide.shape and y_wide.dtype == x_wide.dtype
    assert jnp.allclose(y_wide, ref_wide, atol=1e-6, rtol=1e-6)

    print("KERNEL_OK")
</pallas_src>

<mosaic_0001>
module attributes {stable_mosaic.version = 11 : i64} {
  func.func @_ttanh_kernel(%arg0: i32, %arg1: i32, %arg2: memref<1xf32, #tpu.memory_space<smem>>, %arg3: memref<16x128xf32, #tpu.memory_space<vmem>>, %arg4: memref<16x128xf32, #tpu.memory_space<vmem>>) attributes {dimension_semantics = [#tpu.dimension_semantics<parallel>, #tpu.dimension_semantics<parallel>], iteration_bounds = array<i64: 1, 1>, scalar_prefetch = 0 : i64, scratch_operands = 0 : i64, tpu.core_type = #tpu.core_type<tc>, window_params = [{transform_indices = @transform_0, window_bounds = array<i64: 1>}, {transform_indices = @transform_1, window_bounds = array<i64: 16, 128>}, {transform_indices = @transform_2, window_bounds = array<i64: 16, 128>}]} {
    %c0 = arith.constant 0 : index
    %0 = memref.load %arg2[%c0] : memref<1xf32, #tpu.memory_space<smem>>
    %c0_0 = arith.constant 0 : index
    %c0_1 = arith.constant 0 : index
    %1 = vector.load %arg3[%c0_0, %c0_1] : memref<16x128xf32, #tpu.memory_space<vmem>>, vector<16x128xf32>
    %2 = vector.broadcast %0 : f32 to vector<16x128xf32>
    %3 = arith.mulf %2, %1 : vector<16x128xf32>
    %4 = math.tanh %3 : vector<16x128xf32>
    %c0_2 = arith.constant 0 : index
    %c0_3 = arith.constant 0 : index
    %5 = vector.load %arg4[%c0_2, %c0_3] : memref<16x128xf32, #tpu.memory_space<vmem>>, vector<16x128xf32>
    tpu.vector_store %arg4[%c0_2, %c0_3], %4 {strides = array<i32>} : memref<16x128xf32, #tpu.memory_space<vmem>>, vector<16x128xf32>,
    return
  }
  func.func @transform_0(%arg0: i32, %arg1: i32) -> i32 {
    %c0_i32 = arith.constant 0 : i32
    %c0_i32_0 = arith.constant 0 : i32
    return %c0_i32 : i32
  }
  func.func @transform_1(%arg0: i32, %arg1: i32) -> (i32, i32) {
    %c0_i32 = arith.constant 0 : i32
    return %arg0, %arg1 : i32, i32
  }
  func.func @transform_2(%arg0: i32, %arg1: i32) -> (i32, i32) {
    %c0_i32 = arith.constant 0 : i32
    return %arg0, %arg1 : i32, i32
  }
}

</mosaic_0001>

<bundles_post_ra>
// kernel: tpu_custom_call.1
= control target key start
LH: loop header
LB: loop body
LE: loop exit
PB: predicated region body
PF: predicated region fallthrough
CT: control target
= control target key end

     0   :  { %8 = vsyncpa [#allocation4], 0  ;;  %s162_s0 = inlined_call_operand.<no memory space> [shape: f32[1], index: 0, kind: input, shape index: {}]   ;;  %s163_s1 = inlined_call_operand.hbm [shape: f32[16,128], index: 1, kind: input, shape index: {}]   ;;  %s164_s2 = inlined_call_operand.hbm [shape: f32[16,128], index: 2, kind: output, shape index: {}]  }
   0x1   :  { %9 = vsyncpa [#allocation5], 0  ;;  %s110_s9 = smov [#allocation3]   ;;  %s62_s13 = scalar_lea.hbm %s163_s1, 256 }
   0x2   :  { %s17_s10 = sshll.u32 %s110_s9, 4  ;;  %p63_p0 = scmp.ne.s32.totalorder %s163_s1, %s62_s13  ;;  %s18_s10 = int_to_ptr.vmem [resolvable:$true] %s17_s10 }
   0x3   :  { %p66_p1 = scmp.lt.u32.totalorder %s62_s13, %s163_s1 }
   0x5   :  { %p68_p2 = pnand %p66_p1, %p63_p0 }
   0x7   :  { %71 = shalt.err (!%p68_p2)
}
   0x8   :  { %s72_s18 = scalar_lea.vmem %s18_s10, 256  ;;  %p77_p4 = scmp.lt.s32.totalorder %s18_s10, %s18_s10 }
   0x9   :  { %p73_p3 = scmp.ne.s32.totalorder %s18_s10, %s72_s18  ;;  %p78_p5 = scmp.lt.s32.totalorder %s72_s18, %s72_s18 }
   0xb   :  { %p79_p6 = por %p78_p5, %p77_p4 }
   0xd   :  { %p80_p7 = pnand %p79_p6, %p73_p3 }
   0xf   :  { %83 = shalt.err (!%p80_p7)
}
  0x10   :  { %s111_s19 = smov 128   ;;  %s112_s20 = smov 8  }
  0x11   :  { %23 = dma.hbm_to_vmem [thread:$0]  %s163_s1, 256, %s18_s10, [#allocation4], %s111_s19, %s111_s19, %s112_s20  }
  0x12   :  { %106 = dma.done.wait [#allocation4], 256  }
  0x13   :  { %107 = vsyncadd [#allocation4], 4294967040  ;;  %v30_v0 = vstv %s162_s0  ;;  %v28_v1 = vld [vmem:[#allocation3] sm:$0xff]  ;;  %v29_v2 = vld [vmem:[#allocation3 + $0x8] sm:$0xff]  ;;  %s113_s25 = smov [#allocation6]  }
  0x14   :  { %v31_v3 = vmul.f32 %v30_v0, %v28_v1  ;;  %v32_v4 = vmul.f32 %v30_v0, %v29_v2  ;;  %s42_s26 = sshll.u32 %s113_s25, 4  ;;  %s43_s26 = int_to_ptr.vmem [resolvable:$true] %s42_s26 }
  0x15   :  { %s84_s1 = scalar_lea.vmem %s43_s26, 256  ;;  %p89_p9 = scmp.lt.s32.totalorder %s43_s26, %s43_s26 }
  0x16   :  { %58 = vtanh.f32 %v31_v3  ;;  %p85_p8 = scmp.ne.s32.totalorder %s43_s26, %s84_s1  ;;  %p90_p10 = scmp.lt.s32.totalorder %s84_s1, %s84_s1 }
  0x17   :  { %60 = vtanh.f32 %v32_v4 }
  0x18   :  { %p91_p11 = por %p90_p10, %p89_p9 }
  0x1a   :  { %p92_p12 = pnand %p91_p11, %p85_p8 }
  0x20   :  { %v59_v5 = vpop.eup %58 }
  0x21   :  { %v61_v6 = vpop.eup %60  ;;  %35 = vst [vmem:[#allocation6] sm:$0xff] %v59_v5 }
  0x22   :  { %36 = vst [vmem:[#allocation6 + $0x8] sm:$0xff] %v61_v6 }
  0x23   :  { %95 = shalt.err (!%p92_p12)
}
  0x24   :  { %s96_s28 = scalar_lea.hbm %s164_s2, 256 }
  0x25   :  { %p97_p13 = scmp.ne.s32.totalorder %s164_s2, %s96_s28  ;;  %p100_p0 = scmp.lt.u32.totalorder %s96_s28, %s164_s2 }
  0x27   :  { %p102_p1 = pnand %p100_p0, %p97_p13 }
  0x29   :  { %105 = shalt.err (!%p102_p1)
}
  0x2a   :  { %48 = dma.vmem_to_hbm [thread:$0]  %s43_s26, 256, %s164_s2, [#allocation5], %s111_s19, %s111_s19, %s112_s20  }
  0x2b   :  { %108 = dma.done.wait [#allocation5], 256  }
  0x2c   :  { %109 = vsyncadd [#allocation5], 4294967040 }
  0x2d   :  { %52 = vsyncpa [#allocation4], 1 }
  0x2e   :  { %53 = vsyncpa [#allocation5], 1 }

</bundles_post_ra>
